<compile_context>
chip_gen: v7x
topology: tpu7x:2x2x1
jax: 0.10.0
libtpu: 0.0.40
codegen_flags: <defaults>
</compile_context>

<pallas_src>
import math

import jax
import jax.numpy as jnp
from jax.experimental import pallas as pl
from jax.experimental.pallas import tpu as pltpu


def neumf_kernel(ue_ref, ie_ref, w0u_ref, w0i_ref, w1_ref, w2_ref,
                 b_ref, wo_mlp_ref, wo_mf_ref, bo_ref, out_ref):
    f32 = jnp.float32
    bf16 = jnp.bfloat16
    E = w1_ref.shape[0]

    ue = ue_ref[...]                       # (TB, 2E) bf16: [ue_mlp | ue_mf]
    ie = ie_ref[...]                       # (TB, 2E) bf16: [ie_mlp | ie_mf]
    ue_mlp = ue[:, :E]                     # bf16, fed straight to the MXU
    ie_mlp = ie[:, :E]
    ue_mf = ue[:, E:].astype(f32)          # f32 for the VPU (GMF) path
    ie_mf = ie[:, E:].astype(f32)

    # MLP layer 0: concat(u, i) @ W0 == u @ W0_u + i @ W0_i  (no lane concat).
    h = (jnp.dot(ue_mlp, w0u_ref[...], preferred_element_type=f32)
         + jnp.dot(ie_mlp, w0i_ref[...], preferred_element_type=f32)
         + b_ref[0:1, :])
    h = jnp.maximum(h, 0.0)
    h = jnp.dot(h.astype(bf16), w1_ref[...], preferred_element_type=f32) + b_ref[1:2, :]
    h = jnp.maximum(h, 0.0)
    h = jnp.dot(h.astype(bf16), w2_ref[...], preferred_element_type=f32) + b_ref[2:3, :]
    h = jnp.maximum(h, 0.0)                                   # (TB, E) f32

    # GMF branch.
    mf = ue_mf * ie_mf                                        # (TB, E) f32

    # Output head (Linear 2E -> 1):
    #   concat(h, mf) @ wo == sum(h * wo_mlp + mf * wo_mf, axis=-1)
    # Transpose before the reduce so the result is lane-dense (1, TB) and the
    # store is an unmasked vst (XLU transpose + sublane reduction).
    z = h * wo_mlp_ref[...] + mf * wo_mf_ref[...]             # (TB, E) f32
    zt = jnp.transpose(z)                                     # (E, TB)
    row = jnp.sum(zt, axis=0, keepdims=True) + bo_ref[...]    # (1, TB)
    out_ref[0] = row                                          # block (1, 1, TB)


def _round_up(x, m):
    return ((x + m - 1) // m) * m


def neumf_forward(params, user_idx, item_idx, tile_b=2048):
    """NeuMF_rate forward (eval mode). Returns logits of shape (B,)."""
    B = int(user_idx.shape[0])
    E = params["w1"].shape[0]
    ALIGN = 128

    # Batch tile: large and 128-aligned (lane-dense output, low per-step
    # overhead); capped so the grid has >=2 steps when the batch allows it,
    # so v7x's second TensorCore gets work on the "parallel" axis.
    tb = min(_round_up(tile_b, ALIGN), _round_up(B, ALIGN))
    if B > ALIGN:
        tb = min(tb, _round_up((B + 1) // 2, ALIGN))
    tb = max(tb, ALIGN)
    B_pad = _round_up(B, tb)
    n_tiles = B_pad // tb

    pad = B_pad - B
    u_idx = jnp.pad(user_idx, (0, pad)) if pad else user_idx
    i_idx = jnp.pad(item_idx, (0, pad)) if pad else item_idx

    # One gather per entity from the merged (n, 2E) bf16 tables.
    ue = params["emb_user"][u_idx]        # (B_pad, 2E) bf16
    ie = params["emb_item"][i_idx]        # (B_pad, 2E) bf16

    emb_spec = pl.BlockSpec((tb, 2 * E), lambda i: (i, 0))

    def resident(r, c):
        # Constant index_map -> block fetched once, stays resident in VMEM.
        return pl.BlockSpec((r, c), lambda i: (0, 0))

    out = pl.pallas_call(
        neumf_kernel,
        out_shape=jax.ShapeDtypeStruct((n_tiles, 1, tb), jnp.float32),
        grid=(n_tiles,),
        in_specs=[emb_spec, emb_spec,
                  resident(E, E), resident(E, E),     # w0_u, w0_i (bf16)
                  resident(E, E), resident(E, E),     # w1, w2     (bf16)
                  resident(3, E),                     # packed b0/b1/b2 (f32)
                  resident(1, E), resident(1, E),     # wo_mlp, wo_mf   (f32)
                  resident(1, 1)],                    # bo              (f32)
        out_specs=pl.BlockSpec((1, 1, tb), lambda i: (i, 0, 0)),
        compiler_params=pltpu.CompilerParams(
            dimension_semantics=("parallel",),
            vmem_limit_bytes=32 * 1024 * 1024,
            # Let XLA fuse the two embedding gathers into the Pallas input
            # pipeline (avoids materializing (B_pad, 2E) intermediates in HBM).
            allow_input_fusion=[True, True] + [False] * 8),
    )(ue, ie, params["w0_u"], params["w0_i"], params["w1"], params["w2"],
      params["b_mlp"], params["wo_mlp"], params["wo_mf"], params["bo"])

    # torch .squeeze() on (B, 1) -> (B,); drop batch padding.
    return out.reshape(-1)[:B]


def init_params(key, user_num, item_num, edim):
    ks = jax.random.split(key, 12)
    f32, bf16 = jnp.float32, jnp.bfloat16

    def unif(k, shape, bound):
        return jax.random.uniform(k, shape, f32, -bound, bound)

    p = {}
    # Embeddings: uniform(-0.5/n, 0.5/n) as in the module; merged MLP||MF
    # tables stored bf16 (one gather per entity, lane-denser input streams).
    u_mlp = unif(ks[0], (user_num, edim), 0.5 / user_num)
    i_mlp = unif(ks[1], (item_num, edim), 0.5 / item_num)
    u_mf = unif(ks[2], (user_num, edim), 0.5 / user_num)
    i_mf = unif(ks[3], (item_num, edim), 0.5 / item_num)
    p["emb_user"] = jnp.concatenate([u_mlp, u_mf], axis=1).astype(bf16)
    p["emb_item"] = jnp.concatenate([i_mlp, i_mf], axis=1).astype(bf16)

    # Linear weights pre-transposed to (in_features, out_features),
    # torch default init U(-1/sqrt(fan_in), 1/sqrt(fan_in)). MXU weights bf16.
    bnd0 = 1.0 / math.sqrt(2 * edim)
    bnd1 = 1.0 / math.sqrt(edim)

    w0 = unif(ks[4], (2 * edim, edim), bnd0)
    p["w0_u"] = w0[:edim].astype(bf16)     # split: no lane concat in kernel
    p["w0_i"] = w0[edim:].astype(bf16)
    p["w1"] = unif(ks[5], (edim, edim), bnd1).astype(bf16)
    p["w2"] = unif(ks[6], (edim, edim), bnd1).astype(bf16)
    p["b_mlp"] = jnp.stack([unif(ks[7], (edim,), bnd0),
                            unif(ks[8], (edim,), bnd1),
                            unif(ks[9], (edim,), bnd1)], axis=0)   # (3, E) f32

    wo = unif(ks[10], (2 * edim, 1), bnd0)
    p["wo_mlp"] = wo[:edim, 0].reshape(1, edim)    # f32 (VPU head path)
    p["wo_mf"] = wo[edim:, 0].reshape(1, edim)     # f32
    p["bo"] = unif(ks[11], (1, 1), bnd0)
    return p


def reference_forward(params, user_idx, item_idx):
    """Pure-JAX reference mirroring the kernel's bf16 rounding points."""
    f32, bf16 = jnp.float32, jnp.bfloat16
    E = params["w1"].shape[0]
    ue = params["emb_user"][user_idx].astype(f32)
    ie = params["emb_item"][item_idx].astype(f32)
    ue_mlp, ue_mf = ue[:, :E], ue[:, E:]
    ie_mlp, ie_mf = ie[:, :E], ie[:, E:]
    w0u = params["w0_u"].astype(f32)
    w0i = params["w0_i"].astype(f32)
    w1 = params["w1"].astype(f32)
    w2 = params["w2"].astype(f32)
    h = jnp.maximum(ue_mlp @ w0u + ie_mlp @ w0i + params["b_mlp"][0], 0.0)
    h = jnp.maximum(h.astype(bf16).astype(f32) @ w1 + params["b_mlp"][1], 0.0)
    h = jnp.maximum(h.astype(bf16).astype(f32) @ w2 + params["b_mlp"][2], 0.0)
    mf = ue_mf * ie_mf
    logit = jnp.sum(h * params["wo_mlp"] + mf * params["wo_mf"], axis=-1)
    return logit + params["bo"][0, 0]


if __name__ == "__main__":
    key = jax.random.PRNGKey(0)
    user_num, item_num, edim = 64, 128, 32

    pkey, ukey, ikey = jax.random.split(key, 3)
    params = init_params(pkey, user_num, item_num, edim)

    # Small single-tile batch.
    batch = 8
    uidx = jax.random.randint(ukey, (batch,), 1, user_num, dtype=jnp.int32)
    iidx = jax.random.randint(ikey, (batch,), 1, item_num, dtype=jnp.int32)
    logits = jax.block_until_ready(neumf_forward(params, uidx, iidx))
    ref = reference_forward(params, uidx, iidx)
    assert logits.shape == (batch,)
    assert jnp.allclose(logits, ref, atol=1e-4, rtol=1e-3), (logits, ref)

    # Multi-tile batch exercising the grid, pipelining and padding path
    # (default tile_b -> 128-aligned tile, >=2 grid steps).
    batch2 = 300
    ukey2, ikey2 = jax.random.split(ukey)
    uidx2 = jax.random.randint(ukey2, (batch2,), 1, user_num, dtype=jnp.int32)
    iidx2 = jax.random.randint(ikey2, (batch2,), 1, item_num, dtype=jnp.int32)
    logits2 = jax.block_until_ready(neumf_forward(params, uidx2, iidx2))
    ref2 = reference_forward(params, uidx2, iidx2)
    assert logits2.shape == (batch2,)
    assert jnp.allclose(logits2, ref2, atol=1e-4, rtol=1e-3), (logits2, ref2)

    print("KERNEL_OK")
</pallas_src>

<mosaic_0001>
module attributes {stable_mosaic.version = 11 : i64} {
  func.func @neumf_kernel(%arg0: i32, %arg1: memref<128x64xbf16, #tpu.memory_space<vmem>>, %arg2: memref<128x64xbf16, #tpu.memory_space<vmem>>, %arg3: memref<32x32xbf16, #tpu.memory_space<vmem>>, %arg4: memref<32x32xbf16, #tpu.memory_space<vmem>>, %arg5: memref<32x32xbf16, #tpu.memory_space<vmem>>, %arg6: memref<32x32xbf16, #tpu.memory_space<vmem>>, %arg7: memref<3x32xf32, #tpu.memory_space<vmem>>, %arg8: memref<1x32xf32, #tpu.memory_space<vmem>>, %arg9: memref<1x32xf32, #tpu.memory_space<vmem>>, %arg10: memref<1x1xf32, #tpu.memory_space<vmem>>, %arg11: memref<1x1x128xf32, #tpu.memory_space<vmem>>) attributes {dimension_semantics = [#tpu.dimension_semantics<parallel>], iteration_bounds = array<i64: 1>, scalar_prefetch = 0 : i64, scratch_operands = 0 : i64, tpu.core_type = #tpu.core_type<tc>, window_params = [{transform_indices = @transform_0, window_bounds = array<i64: 128, 64>}, {transform_indices = @transform_1, window_bounds = array<i64: 128, 64>}, {pipeline_mode = #tpu.pipeline_mode<synchronous>, transform_indices = @transform_2, window_bounds = array<i64: 32, 32>}, {pipeline_mode = #tpu.pipeline_mode<synchronous>, transform_indices = @transform_3, window_bounds = array<i64: 32, 32>}, {pipeline_mode = #tpu.pipeline_mode<synchronous>, transform_indices = @transform_4, window_bounds = array<i64: 32, 32>}, {pipeline_mode = #tpu.pipeline_mode<synchronous>, transform_indices = @transform_5, window_bounds = array<i64: 32, 32>}, {pipeline_mode = #tpu.pipeline_mode<synchronous>, transform_indices = @transform_6, window_bounds = array<i64: 3, 32>}, {pipeline_mode = #tpu.pipeline_mode<synchronous>, transform_indices = @transform_7, window_bounds = array<i64: 1, 32>}, {pipeline_mode = #tpu.pipeline_mode<synchronous>, transform_indices = @transform_8, window_bounds = array<i64: 1, 32>}, {pipeline_mode = #tpu.pipeline_mode<synchronous>, transform_indices = @transform_9, window_bounds = array<i64: 1, 1>}, {transform_indices = @transform_10, window_bounds = array<i64: 1, 1, 128>}]} {
    %c0 = arith.constant 0 : index
    %c0_0 = arith.constant 0 : index
    %0 = vector.load %arg1[%c0, %c0_0] : memref<128x64xbf16, #tpu.memory_space<vmem>>, vector<128x64xbf16>
    %c0_1 = arith.constant 0 : index
    %c0_2 = arith.constant 0 : index
    %1 = vector.load %arg2[%c0_1, %c0_2] : memref<128x64xbf16, #tpu.memory_space<vmem>>, vector<128x64xbf16>
    %2 = vector.extract_strided_slice %0 {offsets = [0, 0], sizes = [128, 32], strides = [1, 1]} : vector<128x64xbf16> to vector<128x32xbf16>
    %3 = vector.extract_strided_slice %1 {offsets = [0, 0], sizes = [128, 32], strides = [1, 1]} : vector<128x64xbf16> to vector<128x32xbf16>
    %4 = vector.extract_strided_slice %0 {offsets = [0, 32], sizes = [128, 32], strides = [1, 1]} : vector<128x64xbf16> to vector<128x32xbf16>
    %5 = arith.extf %4 : vector<128x32xbf16> to vector<128x32xf32>
    %6 = vector.extract_strided_slice %1 {offsets = [0, 32], sizes = [128, 32], strides = [1, 1]} : vector<128x64xbf16> to vector<128x32xbf16>
    %7 = arith.extf %6 : vector<128x32xbf16> to vector<128x32xf32>
    %c0_3 = arith.constant 0 : index
    %c0_4 = arith.constant 0 : index
    %8 = vector.load %arg3[%c0_3, %c0_4] : memref<32x32xbf16, #tpu.memory_space<vmem>>, vector<32x32xbf16>
    %cst = arith.constant dense<0.000000e+00> : vector<128x32xf32>
    %9 = tpu.matmul %2, %8, %cst {dimension_numbers = #tpu.dot_dimension_numbers<[1], [0], [0], [1], [0, 0, 1, 1], [], []>} : vector<128x32xbf16>, vector<32x32xbf16>, vector<128x32xf32> -> vector<128x32xf32>
    %c0_5 = arith.constant 0 : index
    %c0_6 = arith.constant 0 : index
    %10 = vector.load %arg4[%c0_5, %c0_6] : memref<32x32xbf16, #tpu.memory_space<vmem>>, vector<32x32xbf16>
    %cst_7 = arith.constant dense<0.000000e+00> : vector<128x32xf32>
    %11 = tpu.matmul %3, %10, %cst_7 {dimension_numbers = #tpu.dot_dimension_numbers<[1], [0], [0], [1], [0, 0, 1, 1], [], []>} : vector<128x32xbf16>, vector<32x32xbf16>, vector<128x32xf32> -> vector<128x32xf32>
    %12 = arith.addf %9, %11 : vector<128x32xf32>
    %c0_8 = arith.constant 0 : index
    %c0_9 = arith.constant 0 : index
    %13 = vector.load %arg7[%c0_8, %c0_9] : memref<3x32xf32, #tpu.memory_space<vmem>>, vector<1x32xf32>
    %14 = vector.broadcast %13 : vector<1x32xf32> to vector<128x32xf32>
    %15 = arith.addf %12, %14 : vector<128x32xf32>
    %cst_10 = arith.constant 0.000000e+00 : f32
    %16 = vector.broadcast %cst_10 : f32 to vector<128x32xf32>
    %17 = arith.maximumf %15, %16 : vector<128x32xf32>
    %18 = arith.truncf %17 : vector<128x32xf32> to vector<128x32xbf16>
    %c0_11 = arith.constant 0 : index
    %c0_12 = arith.constant 0 : index
    %19 = vector.load %arg5[%c0_11, %c0_12] : memref<32x32xbf16, #tpu.memory_space<vmem>>, vector<32x32xbf16>
    %cst_13 = arith.constant dense<0.000000e+00> : vector<128x32xf32>
    %20 = tpu.matmul %18, %19, %cst_13 {dimension_numbers = #tpu.dot_dimension_numbers<[1], [0], [0], [1], [0, 0, 1, 1], [], []>} : vector<128x32xbf16>, vector<32x32xbf16>, vector<128x32xf32> -> vector<128x32xf32>
    %c1 = arith.constant 1 : index
    %c0_14 = arith.constant 0 : index
    %21 = vector.load %arg7[%c1, %c0_14] : memref<3x32xf32, #tpu.memory_space<vmem>>, vector<1x32xf32>
    %22 = vector.broadcast %21 : vector<1x32xf32> to vector<128x32xf32>
    %23 = arith.addf %20, %22 : vector<128x32xf32>
    %cst_15 = arith.constant 0.000000e+00 : f32
    %24 = vector.broadcast %cst_15 : f32 to vector<128x32xf32>
    %25 = arith.maximumf %23, %24 : vector<128x32xf32>
    %26 = arith.truncf %25 : vector<128x32xf32> to vector<128x32xbf16>
    %c0_16 = arith.constant 0 : index
    %c0_17 = arith.constant 0 : index
    %27 = vector.load %arg6[%c0_16, %c0_17] : memref<32x32xbf16, #tpu.memory_space<vmem>>, vector<32x32xbf16>
    %cst_18 = arith.constant dense<0.000000e+00> : vector<128x32xf32>
    %28 = tpu.matmul %26, %27, %cst_18 {dimension_numbers = #tpu.dot_dimension_numbers<[1], [0], [0], [1], [0, 0, 1, 1], [], []>} : vector<128x32xbf16>, vector<32x32xbf16>, vector<128x32xf32> -> vector<128x32xf32>
    %c2 = arith.constant 2 : index
    %c0_19 = arith.constant 0 : index
    %29 = vector.load %arg7[%c2, %c0_19] : memref<3x32xf32, #tpu.memory_space<vmem>>, vector<1x32xf32>
    %30 = vector.broadcast %29 : vector<1x32xf32> to vector<128x32xf32>
    %31 = arith.addf %28, %30 : vector<128x32xf32>
    %cst_20 = arith.constant 0.000000e+00 : f32
    %32 = vector.broadcast %cst_20 : f32 to vector<128x32xf32>
    %33 = arith.maximumf %31, %32 : vector<128x32xf32>
    %34 = arith.mulf %5, %7 : vector<128x32xf32>
    %c0_21 = arith.constant 0 : index
    %c0_22 = arith.constant 0 : index
    %35 = vector.load %arg8[%c0_21, %c0_22] : memref<1x32xf32, #tpu.memory_space<vmem>>, vector<1x32xf32>
    %36 = vector.broadcast %35 : vector<1x32xf32> to vector<128x32xf32>
    %37 = arith.mulf %33, %36 : vector<128x32xf32>
    %c0_23 = arith.constant 0 : index
    %c0_24 = arith.constant 0 : index
    %38 = vector.load %arg9[%c0_23, %c0_24] : memref<1x32xf32, #tpu.memory_space<vmem>>, vector<1x32xf32>
    %39 = vector.broadcast %38 : vector<1x32xf32> to vector<128x32xf32>
    %40 = arith.mulf %34, %39 : vector<128x32xf32>
    %41 = arith.addf %37, %40 : vector<128x32xf32>
    %42 = tpu.transpose %41, [1, 0] : vector<128x32xf32> -> vector<32x128xf32>
    %cst_25 = arith.constant dense<0.000000e+00> : vector<128xf32>
    %43 = vector.multi_reduction <add>, %42, %cst_25 [0] : vector<32x128xf32> to vector<128xf32>
    %44 = vector.shape_cast %43 : vector<128xf32> to vector<1x128xf32>
    %c0_26 = arith.constant 0 : index
    %c0_27 = arith.constant 0 : index
    %45 = vector.load %arg10[%c0_26, %c0_27] : memref<1x1xf32, #tpu.memory_space<vmem>>, vector<1x1xf32>
    %46 = vector.broadcast %45 : vector<1x1xf32> to vector<1x128xf32>
    %47 = arith.addf %44, %46 : vector<1x128xf32>
    %c0_28 = arith.constant 0 : index
    %c0_29 = arith.constant 0 : index
    %c0_30 = arith.constant 0 : index
    %48 = vector.load %arg11[%c0_28, %c0_29, %c0_30] : memref<1x1x128xf32, #tpu.memory_space<vmem>>, vector<1x1x128xf32>
    %49 = vector.shape_cast %48 : vector<1x1x128xf32> to vector<1x128xf32>
    %50 = vector.shape_cast %47 : vector<1x128xf32> to vector<1x1x128xf32>
    tpu.vector_store %arg11[%c0_28, %c0_29, %c0_30], %50 {strides = array<i32>} : memref<1x1x128xf32, #tpu.memory_space<vmem>>, vector<1x1x128xf32>,
    return
  }
  func.func @transform_0(%arg0: i32) -> (i32, i32) {
    %c0_i32 = arith.constant 0 : i32
    %c0_i32_0 = arith.constant 0 : i32
    return %arg0, %c0_i32 : i32, i32
  }
  func.func @transform_1(%arg0: i32) -> (i32, i32) {
    %c0_i32 = arith.constant 0 : i32
    %c0_i32_0 = arith.constant 0 : i32
    return %arg0, %c0_i32 : i32, i32
  }
  func.func @transform_2(%arg0: i32) -> (i32, i32) {
    %c0_i32 = arith.constant 0 : i32
    %c0_i32_0 = arith.constant 0 : i32
    %c0_i32_1 = arith.constant 0 : i32
    return %c0_i32, %c0_i32_0 : i32, i32
  }
  func.func @transform_3(%arg0: i32) -> (i32, i32) {
    %c0_i32 = arith.constant 0 : i32
    %c0_i32_0 = arith.constant 0 : i32
    %c0_i32_1 = arith.constant 0 : i32
    return %c0_i32, %c0_i32_0 : i32, i32
  }
  func.func @transform_4(%arg0: i32) -> (i32, i32) {
    %c0_i32 = arith.constant 0 : i32
    %c0_i32_0 = arith.constant 0 : i32
    %c0_i32_1 = arith.constant 0 : i32
    return %c0_i32, %c0_i32_0 : i32, i32
  }
  func.func @transform_5(%arg0: i32) -> (i32, i32) {
    %c0_i32 = arith.constant 0 : i32
    %c0_i32_0 = arith.constant 0 : i32
    %c0_i32_1 = arith.constant 0 : i32
    return %c0_i32, %c0_i32_0 : i32, i32
  }
  func.func @transform_6(%arg0: i32) -> (i32, i32) {
    %c0_i32 = arith.constant 0 : i32
    %c0_i32_0 = arith.constant 0 : i32
    %c0_i32_1 = arith.constant 0 : i32
    return %c0_i32, %c0_i32_0 : i32, i32
  }
  func.func @transform_7(%arg0: i32) -> (i32, i32) {
    %c0_i32 = arith.constant 0 : i32
    %c0_i32_0 = arith.constant 0 : i32
    %c0_i32_1 = arith.constant 0 : i32
    return %c0_i32, %c0_i32_0 : i32, i32
  }
  func.func @transform_8(%arg0: i32) -> (i32, i32) {
    %c0_i32 = arith.constant 0 : i32
    %c0_i32_0 = arith.constant 0 : i32
    %c0_i32_1 = arith.constant 0 : i32
    return %c0_i32, %c0_i32_0 : i32, i32
  }
  func.func @transform_9(%arg0: i32) -> (i32, i32) {
    %c0_i32 = arith.constant 0 : i32
    %c0_i32_0 = arith.constant 0 : i32
    %c0_i32_1 = arith.constant 0 : i32
    return %c0_i32, %c0_i32_0 : i32, i32
  }
  func.func @transform_10(%arg0: i32) -> (i32, i32, i32) {
    %c0_i32 = arith.constant 0 : i32
    %c0_i32_0 = arith.constant 0 : i32
    %c0_i32_1 = arith.constant 0 : i32
    return %arg0, %c0_i32, %c0_i32_0 : i32, i32, i32
  }
}

</mosaic_0001>

<bundles_post_ra>
// kernel: tpu_custom_call.1
= control target key start
LH: loop header
LB: loop body
LE: loop exit
PB: predicated region body
PF: predicated region fallthrough
CT: control target
= control target key end

     0   :  { %s1650_s0 = inlined_call_operand.vmem [shape: bf16[128,64], index: 0, kind: input, shape index: {}]   ;;  %s1651_s1 = inlined_call_operand.vmem [shape: bf16[128,64], index: 1, kind: input, shape index: {}]   ;;  %s1652_s2 = inlined_call_operand.vmem [shape: bf16[32,32], index: 2, kind: input, shape index: {}]   ;;  %s1653_s3 = inlined_call_operand.vmem [shape: bf16[32,32], index: 3, kind: input, shape index: {}]   ;;  %s1654_s4 = inlined_call_operand.vmem [shape: bf16[32,32], index: 4, kind: input, shape index: {}]   ;;  %s1655_s5 = inlined_call_operand.vmem [shape: bf16[32,32], index: 5, kind: input, shape index: {}]   ;;  %s1656_s6 = inlined_call_operand.vmem [shape: f32[3,32], index: 6, kind: input, shape index: {}]   ;;  %s1657_s7 = inlined_call_operand.vmem [shape: f32[1,32], index: 7, kind: input, shape index: {}]   ;;  %s1658_s8 = inlined_call_operand.vmem [shape: f32[1,32], index: 8, kind: input, shape index: {}]   ;;  %s1659_s9 = inlined_call_operand.<no memory space> [shape: f32[1,1], index: 9, kind: input, shape index: {}]   ;;  %s1660_s10 = inlined_call_operand.hbm [shape: f32[1,1,128], index: 10, kind: output, shape index: {}]  }
   0x1   :  { %v15_v0 = vstv %s1659_s9 }
   0x2   :  { %16 = vst [vmem:[#allocation2] sm:$0x1] %v15_v0 }
   0x3   :  { %v1241_v1 = vld [vmem:[%s1653_s3] sm:$0xff]   ;;  %v1242_v2 = vld [vmem:[%s1653_s3 + $0x8] sm:$0xff]   ;;  %vm163_vm0 = vcmask 261120   ;;  %v1389_v6 = vld [vmem:[%s1651_s1 + $0x10] sm:$0xff]  }
   0x4   :  { %1139 = vmatprep.subr.bf16.mxu0 %v1241_v1  ;;  %v1376_v3 = vld [vmem:[%s1651_s1] sm:$0xff]   ;;  %v1381_v4 = vld [vmem:[%s1651_s1 + $0x8] sm:$0xff]   ;;  %v1399_v8 = vld [vmem:[%s1651_s1 + $0x18] sm:$0xff]  }
   0x5   :  { %1140 = vmatpush3.bf16.msra.mxu0 %v1241_v1  ;;  %v1245_v5 = vld [vmem:[%s1652_s2] sm:$0xff]   ;;  %1143 = vmatprep.mubr.msk.bf16.mxu0 %vm163_vm0, %v1376_v3  ;;  %v1250_v7 = vld [vmem:[%s1652_s2 + $0x8] sm:$0xff]  }
   0x6   :  { %1141 = vmatprep.subr.bf16.mxu0 %v1242_v2  ;;  %v1408_v9 = vld [vmem:[%s1651_s1 + $0x20] sm:$0xff]  }
   0x9   :  { %1142 = vmatpush3.bf16.msra.mxu0 %v1242_v2 }
   0xa   :  { %1159 = vmatprep.subr.bf16.mxu0 %v1245_v5 }
   0xc   :  { %1144 = vmatmul.mubr.msk.bf16.vlgmr.msra.gmra.mrb[0].mxu0 %vm163_vm0, %v1381_v4 }
   0xd   :  { %1160 = vmatpush3.bf16.msra.mxu0 %v1245_v5  ;;  %1147 = vmatprep.mubr.msk.bf16.mxu0 %vm163_vm0, %v1389_v6 }
   0xe   :  { %1161 = vmatprep.subr.bf16.mxu0 %v1250_v7 }
   0xf   :  { %17 = vsyncpa [#allocation4], 0  ;;  %v1417_v10 = vld [vmem:[%s1651_s1 + $0x28] sm:$0xff]   ;;  %v1422_v11 = vld [vmem:[%s1651_s1 + $0x30] sm:$0xff]   ;;  %s1305_s15 = smov 32  }
  0x10   :  { %v1431_v12 = vld [vmem:[%s1651_s1 + $0x38] sm:$0xff]   ;;  %v1436_v13 = vld [vmem:[%s1650_s0] sm:$0xff]   ;;  %v1445_v14 = vld [vmem:[%s1650_s0 + $0x8] sm:$0xff]  }
  0x11   :  { %1162 = vmatpush3.bf16.msra.mxu0 %v1250_v7  ;;  %v1450_v15 = vld [vmem:[%s1650_s0 + $0x10] sm:$0xff]   ;;  %v1459_v16 = vld [vmem:[%s1650_s0 + $0x18] sm:$0xff]   ;;  %v1464_v17 = vld [vmem:[%s1650_s0 + $0x20] sm:$0xff]  }
  0x12   :  { %v1473_v18 = vld [vmem:[%s1650_s0 + $0x28] sm:$0xff]   ;;  %v1478_v19 = vld [vmem:[%s1650_s0 + $0x30] sm:$0xff]   ;;  %v1487_v20 = vld [vmem:[%s1650_s0 + $0x38] sm:$0xff]  }
  0x13   :  { %v1261_v21 = vld [vmem:[%s1654_s4] sm:$0xff]   ;;  %v1262_v22 = vld [vmem:[%s1654_s4 + $0x8] sm:$0xff]  }
  0x14   :  { %1148 = vmatmul.mubr.msk.bf16.gmra.mrb[4].mxu0 %vm163_vm0, %v1399_v8  ;;  %1179 = vmatprep.subr.bf16.mxu1 %v1261_v21  ;;  %v1098_v23 = vld [vmem:[%s1658_s8] ss:$0 sm:$0xff]  ;;  %v1264_v43 = vld [vmem:[%s1655_s5 + $0x8] sm:$0xff]  }
  0x15   :  { %1151 = vmatprep.mubr.msk.bf16.mxu0 %vm163_vm0, %v1408_v9  ;;  %1180 = vmatpush3.bf16.msra.mxu1 %v1261_v21  ;;  %v1263_v24 = vld [vmem:[%s1655_s5] sm:$0xff]   ;;  %s1306_s5 = smov 96  }
  0x16   :  { %1181 = vmatprep.subr.bf16.mxu1 %v1262_v22  ;;  %872 = vrot.lane.b32.xlu0 %v1098_v23, %s1305_s15  ;;  %v1074_v25 = vld [vmem:[%s1656_s6] ss:$0 sm:$0xff] }
  0x19   :  { %1182 = vmatpush3.bf16.msra.mxu1 %v1262_v22 }
  0x1a   :  { %1199 = vmatprep.subr.bf16.mxu1 %v1263_v24 }
  0x1c   :  { %1152 = vmatmul.mubr.msk.bf16.gmra.mrb[8].mxu0 %vm163_vm0, %v1417_v10 }
  0x1d   :  { %1155 = vmatprep.mubr.msk.bf16.mxu0 %vm163_vm0, %v1422_v11 }
  0x24   :  { %1156 = vmatmul.mubr.msk.bf16.gmra.mrb[12].mxu0 %vm163_vm0, %v1431_v12 }
  0x25   :  { %1163 = vmatprep.mubr.msk.bf16.mxu0 %vm163_vm0, %v1436_v13 }
  0x2c   :  { %1164 = vmatmul.mubr.msk.bf16.vlgmr.msra.gmra.mrb[0].mxu0 %vm163_vm0, %v1445_v14 }
  0x2d   :  { %1167 = vmatprep.mubr.msk.bf16.mxu0 %vm163_vm0, %v1450_v15 }
  0x34   :  { %1168 = vmatmul.mubr.msk.bf16.gmra.mrb[4].mxu0 %vm163_vm0, %v1459_v16 }
  0x35   :  { %1171 = vmatprep.mubr.msk.bf16.mxu0 %vm163_vm0, %v1464_v17 }
  0x3c   :  { %1172 = vmatmul.mubr.msk.bf16.gmra.mrb[8].mxu0 %vm163_vm0, %v1473_v18 }
  0x3d   :  { %1175 = vmatprep.mubr.msk.bf16.mxu0 %vm163_vm0, %v1478_v19 }
  0x44   :  { %1176 = vmatmul.mubr.msk.bf16.gmra.mrb[12].mxu0 %vm163_vm0, %v1487_v20 }
  0xff   :  { %v1165_v26 = vpop.f32.mrb[0].mxu0 }
 0x100   :  { %v465_v27 = vadd.f32 %v1165_v26, %v1074_v25  ;;  %v395_v28 = vpop.f32.mrb[1].mxu0 }
 0x101   :  { %v463_v29 = vadd.f32 %v1074_v25, %v395_v28  ;;  %v1166_v30 = vpop.f32.mrb[2].mxu0 }
 0x102   :  { %v466_v31 = vadd.f32 %v1166_v30, %v1074_v25  ;;  %v398_v32 = vpop.f32.mrb[3].mxu0  ;;  %v481_v34 = vmax.f32 %v465_v27, 0.0 }
 0x103   :  { %v464_v33 = vadd.f32 %v1074_v25, %v398_v32  ;;  %v479_v36 = vmax.f32 %v463_v29, 0.0 }
 0x104   :  { %v482_v35 = vmax.f32 %v466_v31, 0.0 }
 0x105   :  { %v480_v37 = vmax.f32 %v464_v33, 0.0 }
 0x106   :  { %v496_v38 = vpack.c.bf16 %v482_v35, %v481_v34 }
 0x107   :  { %v1169_v39 = vpop.f32.mrb[4].mxu0  ;;  %v495_v40 = vpack.c.bf16 %v480_v37, %v479_v36  ;;  %v71_v36 = vunpack.c.l.bf16 %v1436_v13  ;;  %v87_v37 = vunpack.c.l.bf16 %v1376_v3 }
 0x108   :  { %v469_v41 = vadd.f32 %v1169_v39, %v1074_v25  ;;  %v411_v42 = vpop.f32.mrb[5].mxu0  ;;  %v88_v39 = vunpack.c.h.bf16 %v1376_v3 }
 0x109   :  { %v467_v44 = vadd.f32 %v1074_v25, %v411_v42  ;;  %v1170_v45 = vpop.f32.mrb[6].mxu0  ;;  %1183 = vmatprep.mubr.msk.bf16.mxu1 %vm163_vm0, %v495_v40  ;;  %v1520_v40 = vpop.permute.xlu0 %872  ;;  %v89_v42 = vunpack.c.l.bf16 %v1381_v4 }
 0x10a   :  { %v470_v46 = vadd.f32 %v1170_v45, %v1074_v25  ;;  %v414_v47 = vpop.f32.mrb[7].mxu0  ;;  %1184 = vmatmul.mubr.msk.bf16.vlgmr.msra.gmra.mrb[0].mxu1 %vm163_vm0, %v496_v38  ;;  %v485_v49 = vmax.f32 %v469_v41, 0.0  ;;  %v827_v38 = vmul.f32 %v87_v37, %v71_v36  ;;  %v73_v41 = vunpack.c.l.bf16 %v1445_v14 }
 0x10b   :  { %v468_v48 = vadd.f32 %v1074_v25, %v414_v47  ;;  %1200 = vmatpush3.bf16.msra.mxu1 %v1263_v24  ;;  %v483_v51 = vmax.f32 %v467_v44, 0.0  ;;  %v90_v45 = vunpack.c.h.bf16 %v1381_v4  ;;  %v91_v47 = vunpack.c.l.bf16 %v1389_v6 }
 0x10c   :  { %v486_v50 = vmax.f32 %v470_v46, 0.0  ;;  %1201 = vmatprep.subr.bf16.mxu1 %v1264_v43  ;;  %v875_v44 = vmul.f32 %v1520_v40, %v827_v38  ;;  %v75_v46 = vunpack.c.l.bf16 %v1450_v15  ;;  %v829_v3 = vmul.f32 %v89_v42, %v73_v41 }
 0x10d   :  { %v484_v52 = vmax.f32 %v468_v48, 0.0 }
 0x10e   :  { %v498_v53 = vpack.c.bf16 %v486_v50, %v485_v49  ;;  %v76_v49 = vunpack.c.h.bf16 %v1450_v15  ;;  %907 = vrot.lane.b32.xlu0 %v875_v44, %s1306_s5  ;;  %v831_v15 = vmul.f32 %v91_v47, %v75_v46 }
 0x10f   :  { %v497_v54 = vpack.c.bf16 %v484_v52, %v483_v51  ;;  %v1173_v55 = vpop.f32.mrb[8].mxu0  ;;  %1202 = vmatpush3.bf16.msra.mxu1 %v1264_v43  ;;  %v74_v43 = vunpack.c.h.bf16 %v1445_v14  ;;  %v78_v52 = vunpack.c.h.bf16 %v1459_v16 }
 0x110   :  { %v473_v56 = vadd.f32 %v1173_v55, %v1074_v25  ;;  %v427_v57 = vpop.f32.mrb[9].mxu0  ;;  %v93_v55 = vunpack.c.l.bf16 %v1399_v8 }
 0x111   :  { %v471_v58 = vadd.f32 %v1074_v25, %v427_v57  ;;  %v1174_v59 = vpop.f32.mrb[10].mxu0  ;;  %1187 = vmatprep.mubr.msk.bf16.mxu1 %vm163_vm0, %v497_v54  ;;  %v830_v50 = vmul.f32 %v90_v45, %v74_v43  ;;  %v877_v54 = vmul.f32 %v1520_v40, %v829_v3 }
 0x112   :  { %v474_v60 = vadd.f32 %v1174_v59, %v1074_v25  ;;  %v430_v61 = vpop.f32.mrb[11].mxu0  ;;  %1188 = vmatmul.mubr.msk.bf16.gmra.mrb[4].mxu1 %vm163_vm0, %v498_v53  ;;  %v489_v63 = vmax.f32 %v473_v56, 0.0  ;;  %v94_v53 = vunpack.c.h.bf16 %v1399_v8  ;;  %v96_v59 = vunpack.c.h.bf16 %v1408_v9 }
 0x113   :  { %v472_v62 = vadd.f32 %v1074_v25, %v430_v61  ;;  %v487_v1 = vmax.f32 %v471_v58, 0.0  ;;  %v878_v4 = vmul.f32 %v1520_v40, %v830_v50  ;;  %v80_v58 = vunpack.c.h.bf16 %v1464_v17 }
 0x114   :  { %v490_v0 = vmax.f32 %v474_v60, 0.0  ;;  %v834_v57 = vmul.f32 %v94_v53, %v78_v52  ;;  %v879_v60 = vmul.f32 %v1520_v40, %v831_v15 }
 0x115   :  { %v488_v2 = vmax.f32 %v472_v62, 0.0  ;;  %913 = vrot.lane.b32.xlu0 %v878_v4, %s1306_s5  ;;  %v79_v62 = vunpack.c.l.bf16 %v1464_v17  ;;  %v97_v17 = vunpack.c.l.bf16 %v1417_v10 }
 0x116   :  { %v500_v5 = vpack.c.bf16 %v490_v0, %v489_v63  ;;  %v882_v8 = vmul.f32 %v1520_v40, %v834_v57  ;;  %v836_v63 = vmul.f32 %v96_v59, %v80_v58  ;;  %v82_v0 = vunpack.c.h.bf16 %v1473_v18 }
 0x117   :  { %v499_v7 = vpack.c.bf16 %v488_v2, %v487_v1  ;;  %v1177_v21 = vpop.f32.mrb[12].mxu0  ;;  %v98_v1 = vunpack.c.h.bf16 %v1417_v10 }
 0x118   :  { %v477_v22 = vadd.f32 %v1177_v21, %v1074_v25  ;;  %v443_v23 = vpop.f32.mrb[13].mxu0 }
 0x119   :  { %v475_v24 = vadd.f32 %v1074_v25, %v443_v23  ;;  %v1178_v26 = vpop.f32.mrb[14].mxu0  ;;  %1191 = vmatprep.mubr.msk.bf16.mxu1 %vm163_vm0, %v499_v7  ;;  %v81_v7 = vunpack.c.l.bf16 %v1473_v18  ;;  %v838_v21 = vmul.f32 %v98_v1, %v82_v0  ;;  %v100_v23 = vunpack.c.h.bf16 %v1422_v11 }
 0x11a   :  { %v478_v27 = vadd.f32 %v1178_v26, %v1074_v25  ;;  %v446_v28 = vpop.f32.mrb[15].mxu0  ;;  %1192 = vmatmul.mubr.msk.bf16.gmra.mrb[8].mxu1 %vm163_vm0, %v500_v5  ;;  %v493_v30 = vmax.f32 %v477_v22, 0.0  ;;  %v84_v22 = vunpack.c.h.bf16 %v1478_v19  ;;  %v99_v18 = vunpack.c.l.bf16 %v1422_v11 }
 0x11b   :  { %v476_v29 = vadd.f32 %v1074_v25, %v446_v28  ;;  %v491_v32 = vmax.f32 %v475_v24, 0.0  ;;  %v72_v25 = vunpack.c.h.bf16 %v1436_v13  ;;  %v92_v13 = vunpack.c.h.bf16 %v1389_v6 }
 0x11c   :  { %v494_v31 = vmax.f32 %v478_v27, 0.0  ;;  %v77_v6 = vunpack.c.l.bf16 %v1459_v16  ;;  %v95_v16 = vunpack.c.l.bf16 %v1408_v9  ;;  %v884_v9 = vmul.f32 %v1520_v40, %v836_v63 }
 0x11d   :  { %v492_v33 = vmax.f32 %v476_v29, 0.0  ;;  %v828_v48 = vmul.f32 %v88_v39, %v72_v25  ;;  %v832_v51 = vmul.f32 %v92_v13, %v76_v49  ;;  %v837_v26 = vmul.f32 %v97_v17, %v81_v7 }
 0x11e   :  { %v502_v34 = vpack.c.bf16 %v494_v31, %v493_v30  ;;  %v833_v61 = vmul.f32 %v93_v55, %v77_v6  ;;  %v835_v5 = vmul.f32 %v95_v16, %v79_v62  ;;  %v83_v27 = vunpack.c.l.bf16 %v1478_v19 }
 0x11f   :  { %v501_v35 = vpack.c.bf16 %v492_v33, %v491_v32  ;;  %v876_v14 = vmul.f32 %v1520_v40, %v828_v48  ;;  %v880_v56 = vmul.f32 %v1520_v40, %v832_v51  ;;  %v886_v10 = vmul.f32 %v1520_v40, %v838_v21 }
 0x120   :  { %v881_v2 = vmul.f32 %v1520_v40, %v833_v61  ;;  %v883_v24 = vmul.f32 %v1520_v40, %v835_v5  ;;  %v840_v28 = vmul.f32 %v100_v23, %v84_v22  ;;  %v86_v29 = vunpack.c.h.bf16 %v1487_v20 }
 0x121   :  { %1195 = vmatprep.mubr.msk.bf16.mxu1 %vm163_vm0, %v501_v35  ;;  %909 = vrot.lane.b32.xlu1 %v876_v14, %s1306_s5  ;;  %v102_v30 = vunpack.c.h.bf16 %v1431_v12  ;;  %v885_v31 = vmul.f32 %v1520_v40, %v837_v26  ;;  %v839_v32 = vmul.f32 %v99_v18, %v83_v27  ;;  %v85_v33 = vunpack.c.l.bf16 %v1487_v20 }
 0x122   :  { %1196 = vmatmul.mubr.msk.bf16.gmra.mrb[12].mxu1 %vm163_vm0, %v502_v34  ;;  %917 = vrot.lane.b32.xlu0 %v880_v56, %s1306_s5  ;;  %v101_v19 = vunpack.c.l.bf16 %v1431_v12  ;;  %v888_v11 = vmul.f32 %v1520_v40, %v840_v28  ;;  %v1075_v12 = vld [vmem:[%s1656_s6 + $0x1] ss:$0 sm:$0xff] }
 0x123   :  { %v842_v34 = vmul.f32 %v102_v30, %v86_v29  ;;  %v887_v35 = vmul.f32 %v1520_v40, %v839_v32 }
 0x124   :  { %v841_v36 = vmul.f32 %v101_v19, %v85_v33  ;;  %v1307_v19 = vmov 0  }
 0x125   :  { %911 = vrot.lane.b32.xlu1 %v877_v54, %s1306_s5  ;;  %v890_v37 = vmul.f32 %v1520_v40, %v842_v34  ;;  %v1598_v34 = vld [vmem:[%s1656_s6 + $0x2] ss:$0 sm:$0xff]  ;;  %s1308_s6 = smov [#allocation3]  }
 0x126   :  { %921 = vrot.lane.b32.xlu0 %v882_v8, %s1306_s5  ;;  %v889_v20 = vmul.f32 %v1520_v40, %v841_v36  ;;  %1239 = vset.pattern.permute.xlu1 %v1307_v19 }
 0x129   :  { %915 = vrot.lane.b32.xlu1 %v879_v60, %s1306_s5 }
 0x12a   :  { %925 = vrot.lane.b32.xlu0 %v884_v9, %s1306_s5 }
 0x12d   :  { %919 = vrot.lane.b32.xlu1 %v881_v2, %s1306_s5 }
 0x12e   :  { %929 = vrot.lane.b32.xlu0 %v886_v10, %s1306_s5 }
 0x131   :  { %923 = vrot.lane.b32.xlu1 %v883_v24, %s1306_s5 }
 0x132   :  { %933 = vrot.lane.b32.xlu0 %v888_v11, %s1306_s5  ;;  %v1012_v11 = vld [vmem:[#allocation2] sm:$0x1] }
 0x135   :  { %927 = vrot.lane.b32.xlu1 %v885_v31, %s1306_s5 }
 0x136   :  { %937 = vrot.lane.b32.xlu0 %v890_v37, %s1306_s5 }
 0x139   :  { %931 = vrot.lane.b32.xlu1 %v887_v35, %s1306_s5 }
 0x13d   :  { %935 = vrot.lane.b32.xlu1 %v889_v20, %s1306_s5 }
 0x141   :  { %1015 = vperm.xlu1 %1239, %v1012_v11  }
 0x1dd   :  { %v1185_v38 = vpop.f32.mrb[0].mxu1 }
 0x1de   :  { %v591_v39 = vadd.f32 %v1185_v38, %v1075_v12  ;;  %v582_v25 = vpop.f32.mrb[1].mxu1 }
 0x1df   :  { %v583_v41 = vadd.f32 %v1075_v12, %v582_v25  ;;  %v1186_v42 = vpop.f32.mrb[2].mxu1 }
 0x1e0   :  { %v594_v43 = vadd.f32 %v1186_v42, %v1075_v12  ;;  %v585_v44 = vpop.f32.mrb[3].mxu1  ;;  %v647_v46 = vmax.f32 %v591_v39, 0.0 }
 0x1e1   :  { %v586_v45 = vadd.f32 %v1075_v12, %v585_v44  ;;  %v645_v48 = vmax.f32 %v583_v41, 0.0  ;;  %v908_v44 = vpop.permute.xlu0 %907 }
 0x1e2   :  { %v648_v47 = vmax.f32 %v594_v43, 0.0 }
 0x1e3   :  { %v646_v40 = vmax.f32 %v586_v45, 0.0 }
 0x1e4   :  { %v662_v3 = vpack.c.bf16 %v648_v47, %v647_v46 }
 0x1e5   :  { %v661_v49 = vpack.c.bf16 %v646_v40, %v645_v48  ;;  %v1189_v13 = vpop.f32.mrb[4].mxu1 }
 0x1e6   :  { %v607_v50 = vadd.f32 %v1189_v13, %v1075_v12  ;;  %v598_v14 = vpop.f32.mrb[5].mxu1 }
 0x1e7   :  { %v599_v51 = vadd.f32 %v1075_v12, %v598_v14  ;;  %v1190_v52 = vpop.f32.mrb[6].mxu1  ;;  %1203 = vmatprep.mubr.msk.bf16.mxu1 %vm163_vm0, %v661_v49 }
 0x1e8   :  { %v610_v4 = vadd.f32 %v1190_v52, %v1075_v12  ;;  %v601_v53 = vpop.f32.mrb[7].mxu1  ;;  %1204 = vmatmul.mubr.msk.bf16.vlgmr.msra.gmra.mrb[16].mxu1 %vm163_vm0, %v662_v3  ;;  %v651_v15 = vmax.f32 %v607_v50, 0.0  ;;  %v910_v3 = vpop.permute.xlu1 %909 }
 0x1e9   :  { %v602_v54 = vadd.f32 %v1075_v12, %v601_v53  ;;  %v649_v55 = vmax.f32 %v599_v51, 0.0 }
 0x1ea   :  { %v652_v6 = vmax.f32 %v610_v4, 0.0 }
 0x1eb   :  { %v650_v56 = vmax.f32 %v602_v54, 0.0 }
 0x1ec   :  { %v664_v57 = vpack.c.bf16 %v652_v6, %v651_v15  ;;  %v912_v53 = vpop.permute.xlu1 %911 }
 0x1ed   :  { %v663_v58 = vpack.c.bf16 %v650_v56, %v649_v55  ;;  %v1193_v59 = vpop.f32.mrb[8].mxu1 }
 0x1ee   :  { %v623_v60 = vadd.f32 %v1193_v59, %v1075_v12  ;;  %v614_v61 = vpop.f32.mrb[9].mxu1  ;;  %v914_v59 = vpop.permute.xlu0 %913 }
 0x1ef   :  { %v615_v62 = vadd.f32 %v1075_v12, %v614_v61  ;;  %v1194_v16 = vpop.f32.mrb[10].mxu1  ;;  %1207 = vmatprep.mubr.msk.bf16.mxu1 %vm163_vm0, %v663_v58 }
 0x1f0   :  { %v626_v8 = vadd.f32 %v1194_v16, %v1075_v12  ;;  %v617_v63 = vpop.f32.mrb[11].mxu1  ;;  %1208 = vmatmul.mubr.msk.bf16.gmra.mrb[20].mxu1 %vm163_vm0, %v664_v57  ;;  %v655_v1 = vmax.f32 %v623_v60, 0.0 }
 0x1f1   :  { %v618_v0 = vadd.f32 %v1075_v12, %v617_v63  ;;  %v653_v5 = vmax.f32 %v615_v62, 0.0  ;;  %v916_v63 = vpop.permute.xlu1 %915 }
 0x1f2   :  { %v656_v2 = vmax.f32 %v626_v8, 0.0 }
 0x1f3   :  { %v654_v7 = vmax.f32 %v618_v0, 0.0 }
 0x1f4   :  { %v666_v17 = vpack.c.bf16 %v656_v2, %v655_v1 }
 0x1f5   :  { %v665_v9 = vpack.c.bf16 %v654_v7, %v653_v5  ;;  %v1197_v21 = vpop.f32.mrb[12].mxu1 }
 0x1f6   :  { %v639_v22 = vadd.f32 %v1197_v21, %v1075_v12  ;;  %v630_v23 = vpop.f32.mrb[13].mxu1  ;;  %v918_v21 = vpop.permute.xlu0 %917 }
 0x1f7   :  { %v631_v24 = vadd.f32 %v1075_v12, %v630_v23  ;;  %v1198_v26 = vpop.f32.mrb[14].mxu1  ;;  %1211 = vmatprep.mubr.msk.bf16.mxu1 %vm163_vm0, %v665_v9 }
 0x1f8   :  { %v642_v27 = vadd.f32 %v1198_v26, %v1075_v12  ;;  %v633_v18 = vpop.f32.mrb[15].mxu1  ;;  %1212 = vmatmul.mubr.msk.bf16.gmra.mrb[24].mxu1 %vm163_vm0, %v666_v17  ;;  %v659_v28 = vmax.f32 %v639_v22, 0.0 }
 0x1f9   :  { %v634_v10 = vadd.f32 %v1075_v12, %v633_v18  ;;  %v657_v30 = vmax.f32 %v631_v24, 0.0  ;;  %v1604_v12 = vld [vmem:[%s1657_s7] ss:$0 sm:$0xff]  ;;  %v920_v18 = vpop.permute.xlu1 %919  ;;  %s1030_s7 = sshll.u32 %s1308_s6, 4  ;;  %s1031_s7 = int_to_ptr.vmem [resolvable:$true] %s1030_s7 }
 0x1fa   :  { %v660_v29 = vmax.f32 %v642_v27, 0.0  ;;  %s1281_s9 = scalar_lea.vmem %s1031_s7, 16  ;;  %s1285_s23 = scalar_lea.vmem %s1031_s7, 32 }
 0x1fb   :  { %v658_v31 = vmax.f32 %v634_v10, 0.0  ;;  %p1282_p0 = scmp.ne.s32.totalorder %s1031_s7, %s1281_s9  ;;  %p1286_p1 = scmp.lt.s32.totalorder %s1031_s7, %s1031_s7 }
 0x1fc   :  { %v668_v32 = vpack.c.bf16 %v660_v29, %v659_v28  ;;  %p1287_p2 = scmp.lt.s32.totalorder %s1285_s23, %s1281_s9 }
 0x1fd   :  { %v667_v33 = vpack.c.bf16 %v658_v31, %v657_v30  ;;  %v922_v31 = vpop.permute.xlu0 %921 }
 0x1fe   :  { %p1288_p3 = por %p1287_p2, %p1286_p1 }
 0x1ff   :  { %1215 = vmatprep.mubr.msk.bf16.mxu1 %vm163_vm0, %v667_v33 }
 0x200   :  { %1216 = vmatmul.mubr.msk.bf16.gmra.mrb[28].mxu1 %vm163_vm0, %v668_v32  ;;  %p1289_p4 = pnand %p1288_p3, %p1282_p0 }
 0x2bb   :  { %v1205_v35 = vpop.f32.mrb[16].mxu1 }
 0x2bc   :  { %v748_v36 = vpop.f32.mrb[17].mxu1  ;;  %v757_v39 = vadd.f32 %v1205_v35, %v1598_v34 }
 0x2bd   :  { %v749_v37 = vadd.f32 %v1598_v34, %v748_v36  ;;  %v1206_v20 = vpop.f32.mrb[18].mxu1  ;;  %v924_v36 = vpop.permute.xlu1 %923 }
 0x2be   :  { %v751_v38 = vpop.f32.mrb[19].mxu1  ;;  %v813_v45 = vmax.f32 %v757_v39, 0.0  ;;  %v760_v46 = vadd.f32 %v1206_v20, %v1598_v34 }
 0x2bf   :  { %v811_v25 = vmax.f32 %v749_v37, 0.0  ;;  %v752_v41 = vadd.f32 %v1598_v34, %v751_v38 }
 0x2c0   :  { %v852_v14 = vmul.f32 %v1604_v12, %v813_v45  ;;  %v814_v51 = vmax.f32 %v760_v46, 0.0 }
 0x2c1   :  { %v850_v42 = vmul.f32 %v1604_v12, %v811_v25  ;;  %v812_v43 = vmax.f32 %v752_v41, 0.0  ;;  %v926_v25 = vpop.permute.xlu0 %925  ;;  %v928_v45 = vpop.permute.xlu1 %927 }
 0x2c2   :  { %v853_v54 = vmul.f32 %v1604_v12, %v814_v51  ;;  %v957_v56 = vadd.f32 %v912_v53, %v852_v14 }
 0x2c3   :  { %v851_v47 = vmul.f32 %v1604_v12, %v812_v43  ;;  %v1209_v48 = vpop.f32.mrb[20].mxu1  ;;  %v955_v40 = vadd.f32 %v908_v44, %v850_v42 }
 0x2c4   :  { %v764_v49 = vpop.f32.mrb[21].mxu1  ;;  %v773_v61 = vadd.f32 %v1209_v48, %v1598_v34  ;;  %v958_v8 = vadd.f32 %v914_v59, %v853_v54 }
 0x2c5   :  { %v1210_v13 = vpop.f32.mrb[22].mxu1  ;;  %971 = vxpose.xlu0.b32.start [1/16] (narrow) %v955_v40, 32  ;;  %v765_v52 = vadd.f32 %v1598_v34, %v764_v49  ;;  %v956_v4 = vadd.f32 %v910_v3, %v851_v47  ;;  %v930_v3 = vpop.permute.xlu0 %929 }
 0x2c6   :  { %v767_v50 = vpop.f32.mrb[23].mxu1  ;;  %v817_v0 = vmax.f32 %v773_v61, 0.0  ;;  %v776_v1 = vadd.f32 %v1210_v13, %v1598_v34  ;;  %v932_v51 = vpop.permute.xlu1 %931 }
 0x2c7   :  { %v815_v15 = vmax.f32 %v765_v52, 0.0  ;;  %v768_v6 = vadd.f32 %v1598_v34, %v767_v50 }
 0x2c8   :  { %v856_v23 = vmul.f32 %v1604_v12, %v817_v0  ;;  %v818_v24 = vmax.f32 %v776_v1, 0.0  ;;  %v1018_v0 = vlaneseq }
 0x2c9   :  { %972 = vxpose.xlu0.b32.cont [2/16] (narrow) %v956_v4, 32  ;;  %v854_v62 = vmul.f32 %v1604_v12, %v815_v15  ;;  %v816_v16 = vmax.f32 %v768_v6, 0.0  ;;  %v934_v15 = vpop.permute.xlu0 %933 }
 0x2ca   :  { %v857_v10 = vmul.f32 %v1604_v12, %v818_v24  ;;  %v961_v30 = vadd.f32 %v920_v18, %v856_v23 }
 0x2cb   :  { %v1213_v55 = vpop.f32.mrb[24].mxu1  ;;  %v855_v2 = vmul.f32 %v1604_v12, %v816_v16  ;;  %v959_v7 = vadd.f32 %v916_v63, %v854_v62 }
 0x2cc   :  { %v780_v57 = vpop.f32.mrb[25].mxu1  ;;  %v789_v32 = vadd.f32 %v1213_v55, %v1598_v34  ;;  %v962_v35 = vadd.f32 %v922_v31, %v857_v10 }
 0x2cd   :  { %v1214_v58 = vpop.f32.mrb[26].mxu1  ;;  %973 = vxpose.xlu0.b32.cont [3/16] (narrow) %v957_v56, 32  ;;  %v781_v26 = vadd.f32 %v1598_v34, %v780_v57  ;;  %v960_v27 = vadd.f32 %v918_v21, %v855_v2  ;;  %v936_v57 = vpop.permute.xlu1 %935 }
 0x2ce   :  { %v783_v60 = vpop.f32.mrb[27].mxu1  ;;  %v821_v37 = vmax.f32 %v789_v32, 0.0  ;;  %v792_v20 = vadd.f32 %v1214_v58, %v1598_v34 }
 0x2cf   :  { %v819_v28 = vmax.f32 %v781_v26, 0.0  ;;  %v784_v29 = vadd.f32 %v1598_v34, %v783_v60  ;;  %v938_v60 = vpop.permute.xlu0 %937 }
 0x2d0   :  { %v860_v41 = vmul.f32 %v1604_v12, %v821_v37  ;;  %v822_v42 = vmax.f32 %v792_v20, 0.0 }
 0x2d1   :  { %974 = vxpose.xlu0.b32.cont [4/16] (narrow) %v958_v8, 32  ;;  %v858_v33 = vmul.f32 %v1604_v12, %v819_v28  ;;  %v820_v11 = vmax.f32 %v784_v29, 0.0  ;;  %v1016_v21 = vpop.permute.xlu1 %1015 }
 0x2d2   :  { %v861_v46 = vmul.f32 %v1604_v12, %v822_v42  ;;  %v965_v40 = vadd.f32 %v928_v45, %v860_v41 }
 0x2d3   :  { %v1217_v5 = vpop.f32.mrb[28].mxu1  ;;  %v859_v38 = vmul.f32 %v1604_v12, %v820_v11  ;;  %v963_v39 = vadd.f32 %v924_v36, %v858_v33 }
 0x2d4   :  { %v796_v17 = vpop.f32.mrb[29].mxu1  ;;  %v805_v49 = vadd.f32 %v1217_v5, %v1598_v34  ;;  %v966_v14 = vadd.f32 %v930_v3, %v861_v46 }
 0x2d5   :  { %v1218_v9 = vpop.f32.mrb[30].mxu1  ;;  %975 = vxpose.xlu0.b32.cont [5/16] (narrow) %v959_v7, 32  ;;  %v797_v43 = vadd.f32 %v1598_v34, %v796_v17  ;;  %v964_v44 = vadd.f32 %v926_v25, %v859_v38  ;;  %v1019_v7 = vshrl.u32 %v1018_v0, 7 }
 0x2d6   :  { %v799_v22 = vpop.f32.mrb[31].mxu1  ;;  %v825_v52 = vmax.f32 %v805_v49, 0.0  ;;  %v808_v4 = vadd.f32 %v1218_v9, %v1598_v34 }
 0x2d7   :  { %v823_v47 = vmax.f32 %v797_v43, 0.0  ;;  %v800_v48 = vadd.f32 %v1598_v34, %v799_v22 }
 0x2d8   :  { %v864_v6 = vmul.f32 %v1604_v12, %v825_v52  ;;  %v826_v55 = vmax.f32 %v808_v4, 0.0 }
 0x2d9   :  { %976 = vxpose.xlu0.b32.cont [6/16] (narrow) %v960_v27, 32  ;;  %v862_v13 = vmul.f32 %v1604_v12, %v823_v47  ;;  %v824_v50 = vmax.f32 %v800_v48, 0.0 }
 0x2da   :  { %v865_v58 = vmul.f32 %v1604_v12, %v826_v55  ;;  %v969_v59 = vadd.f32 %v936_v57, %v864_v6 }
 0x2db   :  { %v863_v53 = vmul.f32 %v1604_v12, %v824_v50  ;;  %v967_v54 = vadd.f32 %v932_v51, %v862_v13  ;;  %v1020_v12 = vsub.s32 0, %v1019_v7 }
 0x2dc   :  { %v970_v61 = vadd.f32 %v938_v60, %v865_v58 }
 0x2dd   :  { %977 = vxpose.xlu0.b32.cont [7/16] (narrow) %v961_v30, 32  ;;  %v968_v56 = vadd.f32 %v934_v15, %v863_v53  ;;  %v1021_v23 = vrot.slane %v1016_v21, %v1020_v12 }
 0x2e1   :  { %978 = vxpose.xlu0.b32.cont [8/16] (narrow) %v962_v35, 32 }
 0x2e5   :  { %979 = vxpose.xlu0.b32.cont [9/16] (narrow) %v963_v39, 32 }
 0x2e9   :  { %980 = vxpose.xlu0.b32.cont [10/16] (narrow) %v964_v44, 32 }
 0x2ed   :  { %981 = vxpose.xlu0.b32.cont [11/16] (narrow) %v965_v40, 32 }
 0x2f1   :  { %982 = vxpose.xlu0.b32.cont [12/16] (narrow) %v966_v14, 32 }
 0x2f5   :  { %983 = vxpose.xlu0.b32.cont [13/16] (narrow) %v967_v54, 32 }
 0x2f9   :  { %984 = vxpose.xlu0.b32.cont [14/16] (narrow) %v968_v56, 32 }
 0x2fd   :  { %985 = vxpose.xlu0.b32.cont [15/16] (narrow) %v969_v59, 32 }
 0x301   :  { %986 = vxpose.xlu0.b32.end [16/16] (narrow) %v970_v61, 32 }
 0x32a   :  { %1240 = vset.pattern.permute.xlu0 %v1307_v19 }
 0x345   :  { %v987_v34 = vpop.trf.xlu0 }
 0x349   :  { %v988_v62 = vpop.trf.xlu0 }
 0x34a   :  { %v1003_v8 = vadd.f32 %v988_v62, %v987_v34 }
 0x34d   :  { %v989_v16 = vpop.trf.xlu0 }
 0x34e   :  { %v1004_v63 = vadd.f32 %v1003_v8, %v989_v16 }
 0x351   :  { %v990_v1 = vpop.trf.xlu0 }
 0x352   :  { %v1005_v2 = vadd.f32 %v1004_v63, %v990_v1 }
 0x354   :  { %v1006_v5 = vrot.slane %v1005_v2, 4 }
 0x356   :  { %v1007_v17 = vadd.f32 %v1006_v5, %v1005_v2 }
 0x358   :  { %v1008_v9 = vrot.slane %v1007_v17, 2 }
 0x35a   :  { %v1009_v22 = vadd.f32 %v1008_v9, %v1007_v17 }
 0x35c   :  { %v1010_v24 = vrot.slane %v1009_v22, 1 }
 0x35e   :  { %v1011_v19 = vadd.f32 %v1010_v24, %v1009_v22 }
 0x360   :  { %v1022_v26 = vadd.f32 %v1021_v23, %v1011_v19 }
 0x362   :  { %1023 = vst [vmem:[#allocation3] sm:$0x1] %v1022_v26 }
 0x363   :  { %1292 = shalt.err (!%p1289_p4)
}
 0x364   :  { %s1293_s25 = scalar_lea.hbm %s1660_s10, 16 }
 0x365   :  { %p1294_p5 = scmp.ne.s32.totalorder %s1660_s10, %s1293_s25  ;;  %p1297_p6 = scmp.lt.u32.totalorder %s1293_s25, %s1660_s10 }
 0x367   :  { %p1299_p7 = pnand %p1297_p6, %p1294_p5 }
 0x369   :  { %1302 = shalt.err (!%p1299_p7)
}
 0x36a   :  { %1033 = dma.vmem_to_hbm [thread:$0]  %s1031_s7, 16, %s1660_s10, [#allocation4]  }
 0x36b   :  { %1303 = dma.done.wait [#allocation4], 16  }
 0x36c   :  { %1304 = vsyncadd [#allocation4], 4294967280 }
 0x36d   :  { %1037 = vsyncpa [#allocation4], 1 }

</bundles_post_ra>
